<compile_context>
chip_gen: v5e
topology: v5e:2x2
jax: 0.10.0
libtpu: 0.0.40
codegen_flags: <defaults>
</compile_context>

<pallas_src>
import jax
import jax.numpy as jnp
from jax.experimental import pallas as pl
from jax.experimental.pallas import tpu as pltpu


def _round_up(x, m):
    return (x + m - 1) // m * m


def _sigmoid_fast(x):
    # sigmoid(x) == 0.5 * tanh(0.5 * x) + 0.5 : one EUP op, no divide chain.
    return 0.5 * jnp.tanh(0.5 * x) + 0.5


def _target_net_kernel(
    scal_ref,       # SMEM (4,) : [fc3_w_pe, fc3_w_ed, fc3_b, prednet3_b]
    stu_emb_ref,    # (TB, K)   bf16
    pk_kd_ref,      # (TB, P+K) bf16   packed [p_k, k_difficulty]
    pe_ed_ref,      # (TB, 2)   f32    packed [p_e, e_difficulty]
    kp_ref,         # (TB, K)   f32
    fc1_wk_ref,     # (K, K)    bf16   fc1.weight[:, P:].T
    fc1_beff_ref,   # (1, K)    f32    folded conv/new_stu path + fc1 bias
    fc2_wt_ref,     # (P+K, K)  bf16   fc2.weight.T
    fc2_b_ref,      # (1, K)    f32
    w1_ref,         # (K, H1)   bf16   |prednet_full1.weight|.T
    b1_ref,         # (1, H1)   f32
    w2_ref,         # (H1, H2)  bf16   |prednet_full2.weight|.T
    b2_ref,         # (1, H2)   f32
    w3_ref,         # (H2, 1)   bf16   |prednet_full3.weight|.T
    out_ref,        # (1, TB)   f32    lane-dense output row
):
    f32 = jnp.float32
    bf16 = jnp.bfloat16

    # --- com_sta_emb = sigmoid(fc1(cat([new_stu, stu_emb]))) --------------------
    # new_stu contribution is pre-folded into fc1_beff (wrapper).
    z1 = (
        jnp.dot(stu_emb_ref[...], fc1_wk_ref[...], preferred_element_type=f32)
        + fc1_beff_ref[...]
    )
    com_sta = _sigmoid_fast(z1)                                          # (TB, K)

    # --- com_k_difficulty = sigmoid(fc2(cat([p_k, k_difficulty]))) --------------
    z2 = (
        jnp.dot(pk_kd_ref[...], fc2_wt_ref[...], preferred_element_type=f32)
        + fc2_b_ref[...]
    )
    com_k = _sigmoid_fast(z2)                                            # (TB, K)

    # --- new_e_difficulty = sigmoid(fc3(cat([p_e, e_difficulty]))) --------------
    pe_ed = pe_ed_ref[...]                                               # (TB, 2)
    new_e = _sigmoid_fast(
        pe_ed[:, 0:1] * scal_ref[0] + pe_ed[:, 1:2] * scal_ref[1] + scal_ref[2]
    )                                                                    # (TB, 1)

    input_x = new_e * (com_sta - com_k) * kp_ref[...]                    # (TB, K)

    # --- PosLinear stack (weights already |W| and bf16 from the wrapper) --------
    # TODO(synk): Dropout(p=0.5) layers are identity in eval/inference mode;
    # training-mode stochastic masking is not implemented here.
    h1 = _sigmoid_fast(
        jnp.dot(input_x.astype(bf16), w1_ref[...], preferred_element_type=f32)
        + b1_ref[...]
    )                                                                    # (TB, H1)
    h2 = _sigmoid_fast(
        jnp.dot(h1.astype(bf16), w2_ref[...], preferred_element_type=f32)
        + b2_ref[...]
    )                                                                    # (TB, H2)
    y = _sigmoid_fast(
        jnp.dot(h2.astype(bf16), w3_ref[...], preferred_element_type=f32)
        + scal_ref[3]
    )                                                                    # (TB, 1)

    # Lane-dense store: one unmasked vreg row per 128 batch elements.
    out_ref[...] = jnp.transpose(y).astype(out_ref.dtype)                # (1, TB)


def target_net_forward(params, stu_id, input_exercise, input_knowledge_point,
                       *, batch_tile=256):
    """Full Target_Net.forward (eval mode) as one fused Pallas kernel."""
    f32 = jnp.float32
    bf16 = jnp.bfloat16

    # --- Embedding lookups: XLA gathers (wrapper-side plumbing) -----------------
    stu_emb = params["student_emb"][stu_id].astype(f32)                 # (B, K)
    k_diff = params["k_difficulty"][input_exercise].astype(f32)         # (B, K)
    e_diff = params["e_difficulty"][input_exercise].astype(f32)         # (B, 1)
    p_k = params["prompt_k_difficulty"][input_exercise].astype(f32)     # (B, P)
    p_e = params["prompt_e_difficulty"][input_exercise].astype(f32)     # (B, 1)
    kp = input_knowledge_point.astype(f32)                              # (B, K)

    b, k = stu_emb.shape
    p = p_k.shape[1]
    c = params["s_stu_vectors"].shape[0]

    # --- One-time parameter plumbing (all hoisted out of the kernel) ------------
    stu_vectors = params["s_stu_vectors"].astype(f32)                   # (C, P)
    conv_w = params["conv_w"].reshape(1, c).astype(f32)                 # (1, C)
    conv_b = params["conv_b"].astype(f32)                               # (1,)
    new_stu = conv_w @ stu_vectors + conv_b                             # (1, P)

    fc1_w = params["fc1_w"].astype(f32)                                 # (K, P+K)
    fc2_w = params["fc2_w"].astype(f32)                                 # (K, P+K)
    # Fold the batch-invariant conv/new_stu path into an effective fc1 bias.
    fc1_beff = new_stu @ fc1_w[:, :p].T + params["fc1_b"].reshape(1, k).astype(f32)
    fc1_wk = fc1_w[:, p:].T.astype(bf16)                                # (K, K)
    fc2_wt = fc2_w.T.astype(bf16)                                       # (P+K, K)
    fc2_b = params["fc2_b"].reshape(1, k).astype(f32)

    # PosLinear weight transform 2*relu(-W)+W == |W| : done once here.
    w1_abs = jnp.abs(params["w1"]).astype(f32).T.astype(bf16)           # (K, H1)
    w2_abs = jnp.abs(params["w2"]).astype(f32).T.astype(bf16)           # (H1, H2)
    w3_abs = jnp.abs(params["w3"]).astype(f32).T.astype(bf16)           # (H2, 1)
    b1 = params["b1"].reshape(1, -1).astype(f32)
    b2 = params["b2"].reshape(1, -1).astype(f32)
    h1_dim, h2_dim = w1_abs.shape[1], w2_abs.shape[1]

    # Tiny scalar parameters go through scalar prefetch (SMEM).
    scalars = jnp.stack(
        [params["fc3_w"][0, 0], params["fc3_w"][0, 1],
         params["fc3_b"][0], params["b3"][0]]
    ).astype(f32)

    # Pack batch inputs: lane-dense fc2 operand + merged 2-wide e-difficulty.
    stu_emb_bf = stu_emb.astype(bf16)                                   # (B, K)
    pk_kd_bf = jnp.concatenate([p_k, k_diff], axis=1).astype(bf16)      # (B, P+K)
    pe_ed = jnp.concatenate([p_e, e_diff], axis=1)                      # (B, 2)

    # --- Batch tiling ------------------------------------------------------------
    #  * b <= 128            : single tile (rounded to 8 rows).
    #  * 128 < b <= 2*tile   : 2 tiles of 128-multiple rows (shards across v7x's
    #                          two TensorCores via the "parallel" grid axis).
    #  * otherwise           : batch_tile-row tiles (256 fills the v6e/v7x MXU).
    if b <= 128:
        tb = _round_up(max(b, 1), 8)
        b_pad = tb
    elif b <= 2 * batch_tile:
        tb = _round_up(pl.cdiv(b, 2), 128)
        b_pad = 2 * tb
    else:
        tb = batch_tile
        b_pad = _round_up(b, batch_tile)

    def pad_b(x):
        if b_pad == b:
            return x
        return jnp.pad(x, ((0, b_pad - b), (0, 0)))

    stu_emb_bf, pk_kd_bf, pe_ed, kp = map(pad_b, (stu_emb_bf, pk_kd_bf, pe_ed, kp))

    def bmap(i, scal):      # batch-tiled inputs
        return (i, 0)

    def wmap(i, scal):      # VMEM-resident weights (same block every step)
        return (0, 0)

    batch_spec = lambda cols: pl.BlockSpec((tb, cols), bmap)
    fixed_spec = lambda rows, cols: pl.BlockSpec((rows, cols), wmap)

    out = pl.pallas_call(
        _target_net_kernel,
        out_shape=jax.ShapeDtypeStruct((1, b_pad), f32),
        grid_spec=pltpu.PrefetchScalarGridSpec(
            num_scalar_prefetch=1,
            grid=(b_pad // tb,),
            in_specs=[
                batch_spec(k),              # stu_emb (bf16)
                batch_spec(p + k),          # packed [p_k, k_difficulty] (bf16)
                batch_spec(2),              # packed [p_e, e_difficulty]
                batch_spec(k),              # input_knowledge_point
                fixed_spec(k, k),           # fc1_wk
                fixed_spec(1, k),           # fc1_b_eff (conv path folded in)
                fixed_spec(p + k, k),       # fc2_wt
                fixed_spec(1, k),           # fc2_b
                fixed_spec(k, h1_dim),      # |w1|.T
                fixed_spec(1, h1_dim),      # b1
                fixed_spec(h1_dim, h2_dim), # |w2|.T
                fixed_spec(1, h2_dim),      # b2
                fixed_spec(h2_dim, 1),      # |w3|.T
            ],
            out_specs=pl.BlockSpec((1, tb), lambda i, scal: (0, i)),
        ),
        compiler_params=pltpu.CompilerParams(
            dimension_semantics=("parallel",),
        ),
    )(
        scalars,
        stu_emb_bf, pk_kd_bf, pe_ed, kp,
        fc1_wk, fc1_beff,
        fc2_wt, fc2_b,
        w1_abs, b1, w2_abs, b2, w3_abs,
    )

    # output_1.view(-1)
    return out[0, :b]


def reference_forward(params, stu_id, input_exercise, input_knowledge_point):
    """Pure-JAX f32 reference of Target_Net.forward (eval mode)."""
    sig = jax.nn.sigmoid
    stu_emb = params["student_emb"][stu_id]
    k_diff = params["k_difficulty"][input_exercise]
    e_diff = params["e_difficulty"][input_exercise]
    p_k = params["prompt_k_difficulty"][input_exercise]
    p_e = params["prompt_e_difficulty"][input_exercise]

    conv_w = params["conv_w"][:, :, 0]                                  # (1, C)
    new_stu = conv_w @ params["s_stu_vectors"] + params["conv_b"][:, None]

    b = stu_emb.shape[0]
    com_sta_in = jnp.concatenate(
        [jnp.broadcast_to(new_stu, (b, new_stu.shape[1])), stu_emb], axis=1)
    com_sta = sig(com_sta_in @ params["fc1_w"].T + params["fc1_b"])
    com_k_in = jnp.concatenate([p_k, k_diff], axis=1)
    com_k = sig(com_k_in @ params["fc2_w"].T + params["fc2_b"])
    new_e = sig(
        jnp.concatenate([p_e, e_diff], axis=1) @ params["fc3_w"].T + params["fc3_b"])

    input_x = new_e * (com_sta - com_k) * input_knowledge_point.astype(jnp.float32)
    h1 = sig(input_x @ jnp.abs(params["w1"]).T + params["b1"])
    h2 = sig(h1 @ jnp.abs(params["w2"]).T + params["b2"])
    y = sig(h2 @ jnp.abs(params["w3"]).T + params["b3"])
    return y.reshape(-1)


if __name__ == "__main__":
    key = jax.random.PRNGKey(0)
    keys = jax.random.split(key, 24)

    # Small shapes consistent with the module.
    STUDENT_N, EXER_N = 40, 32
    KNOWLEDGE_N = 64            # knowledge_dim
    PP_DIM = 64                 # pp_dim  (prednet_input_len = 128)
    S_RANGES_LEN = 3            # len(s_ranges) -> Conv1d input channels
    H1, H2 = 512, 256           # prednet_len1, prednet_len2
    B = 8

    def xavier(rk, shape):
        fan_out, fan_in = shape[0], shape[1]
        std = jnp.sqrt(2.0 / (fan_in + fan_out))
        return std * jax.random.normal(rk, shape, dtype=jnp.float32)

    params = {
        "student_emb": xavier(keys[0], (STUDENT_N, KNOWLEDGE_N)),
        "k_difficulty": xavier(keys[1], (EXER_N, KNOWLEDGE_N)),
        "e_difficulty": xavier(keys[2], (EXER_N, 1)),
        "prompt_k_difficulty": xavier(keys[3], (EXER_N, PP_DIM)),
        "prompt_e_difficulty": xavier(keys[4], (EXER_N, 1)),
        "s_stu_vectors": jax.random.uniform(keys[5], (S_RANGES_LEN, PP_DIM),
                                            dtype=jnp.float32),
        "conv_w": xavier(keys[6], (1, S_RANGES_LEN))[:, :, None],       # (1, C, 1)
        "conv_b": jax.random.uniform(keys[7], (1,), dtype=jnp.float32,
                                     minval=-0.5, maxval=0.5),
        "fc1_w": xavier(keys[8], (KNOWLEDGE_N, PP_DIM + KNOWLEDGE_N)),
        "fc1_b": 0.1 * jax.random.normal(keys[9], (KNOWLEDGE_N,), dtype=jnp.float32),
        "fc2_w": xavier(keys[10], (KNOWLEDGE_N, PP_DIM + KNOWLEDGE_N)),
        "fc2_b": 0.1 * jax.random.normal(keys[11], (KNOWLEDGE_N,), dtype=jnp.float32),
        "fc3_w": xavier(keys[12], (1, 2)),
        "fc3_b": 0.1 * jax.random.normal(keys[13], (1,), dtype=jnp.float32),
        "w1": xavier(keys[14], (H1, KNOWLEDGE_N)),
        "b1": 0.1 * jax.random.normal(keys[15], (H1,), dtype=jnp.float32),
        "w2": xavier(keys[16], (H2, H1)),
        "b2": 0.1 * jax.random.normal(keys[17], (H2,), dtype=jnp.float32),
        "w3": xavier(keys[18], (1, H2)),
        "b3": 0.1 * jax.random.normal(keys[19], (1,), dtype=jnp.float32),
    }

    stu_id = jax.random.randint(keys[20], (B,), 0, STUDENT_N)
    input_exercise = jax.random.randint(keys[21], (B,), 0, EXER_N)
    input_knowledge_point = jax.random.bernoulli(
        keys[22], 0.5, (B, KNOWLEDGE_N)).astype(jnp.float32)

    out = target_net_forward(params, stu_id, input_exercise, input_knowledge_point)
    jax.block_until_ready(out)

    ref = reference_forward(params, stu_id, input_exercise, input_knowledge_point)

    assert out.shape == (B,), out.shape
    # bf16 matmul operands (f32 accumulate) + tanh-form sigmoid are not bit-exact
    # vs. the f32 exp-form reference; use a small numeric tolerance.
    assert jnp.allclose(out, ref, atol=1e-2, rtol=1e-2), (
        f"max abs diff {jnp.max(jnp.abs(out - ref))}")

    print("KERNEL_OK")
</pallas_src>

<mosaic_0001>
module attributes {stable_mosaic.version = 11 : i64} {
  func.func @_target_net_kernel(%arg0: i32, %arg1: memref<4xf32, #tpu.memory_space<smem>>, %arg2: memref<8x64xbf16, #tpu.memory_space<vmem>>, %arg3: memref<8x128xbf16, #tpu.memory_space<vmem>>, %arg4: memref<8x2xf32, #tpu.memory_space<vmem>>, %arg5: memref<8x64xf32, #tpu.memory_space<vmem>>, %arg6: memref<64x64xbf16, #tpu.memory_space<vmem>>, %arg7: memref<1x64xf32, #tpu.memory_space<vmem>>, %arg8: memref<128x64xbf16, #tpu.memory_space<vmem>>, %arg9: memref<1x64xf32, #tpu.memory_space<vmem>>, %arg10: memref<64x512xbf16, #tpu.memory_space<vmem>>, %arg11: memref<1x512xf32, #tpu.memory_space<vmem>>, %arg12: memref<512x256xbf16, #tpu.memory_space<vmem>>, %arg13: memref<1x256xf32, #tpu.memory_space<vmem>>, %arg14: memref<256x1xbf16, #tpu.memory_space<vmem>>, %arg15: memref<1x8xf32, #tpu.memory_space<vmem>>) attributes {dimension_semantics = [#tpu.dimension_semantics<parallel>], iteration_bounds = array<i64: 1>, scalar_prefetch = 1 : i64, scratch_operands = 0 : i64, tpu.core_type = #tpu.core_type<tc>, window_params = [{transform_indices = @transform_0, window_bounds = array<i64: 8, 64>}, {transform_indices = @transform_1, window_bounds = array<i64: 8, 128>}, {transform_indices = @transform_2, window_bounds = array<i64: 8, 2>}, {transform_indices = @transform_3, window_bounds = array<i64: 8, 64>}, {pipeline_mode = #tpu.pipeline_mode<synchronous>, transform_indices = @transform_4, window_bounds = array<i64: 64, 64>}, {pipeline_mode = #tpu.pipeline_mode<synchronous>, transform_indices = @transform_5, window_bounds = array<i64: 1, 64>}, {pipeline_mode = #tpu.pipeline_mode<synchronous>, transform_indices = @transform_6, window_bounds = array<i64: 128, 64>}, {pipeline_mode = #tpu.pipeline_mode<synchronous>, transform_indices = @transform_7, window_bounds = array<i64: 1, 64>}, {pipeline_mode = #tpu.pipeline_mode<synchronous>, transform_indices = @transform_8, window_bounds = array<i64: 64, 512>}, {pipeline_mode = #tpu.pipeline_mode<synchronous>, transform_indices = @transform_9, window_bounds = array<i64: 1, 512>}, {pipeline_mode = #tpu.pipeline_mode<synchronous>, transform_indices = @transform_10, window_bounds = array<i64: 512, 256>}, {pipeline_mode = #tpu.pipeline_mode<synchronous>, transform_indices = @transform_11, window_bounds = array<i64: 1, 256>}, {pipeline_mode = #tpu.pipeline_mode<synchronous>, transform_indices = @transform_12, window_bounds = array<i64: 256, 1>}, {transform_indices = @transform_13, window_bounds = array<i64: 1, 8>}]} {
    %c0 = arith.constant 0 : index
    %c0_0 = arith.constant 0 : index
    %0 = vector.load %arg2[%c0, %c0_0] : memref<8x64xbf16, #tpu.memory_space<vmem>>, vector<8x64xbf16>
    %c0_1 = arith.constant 0 : index
    %c0_2 = arith.constant 0 : index
    %1 = vector.load %arg6[%c0_1, %c0_2] : memref<64x64xbf16, #tpu.memory_space<vmem>>, vector<64x64xbf16>
    %cst = arith.constant dense<0.000000e+00> : vector<8x64xf32>
    %2 = tpu.matmul %0, %1, %cst {dimension_numbers = #tpu.dot_dimension_numbers<[1], [0], [0], [1], [0, 0, 1, 1], [], []>} : vector<8x64xbf16>, vector<64x64xbf16>, vector<8x64xf32> -> vector<8x64xf32>
    %c0_3 = arith.constant 0 : index
    %c0_4 = arith.constant 0 : index
    %3 = vector.load %arg7[%c0_3, %c0_4] : memref<1x64xf32, #tpu.memory_space<vmem>>, vector<1x64xf32>
    %4 = vector.broadcast %3 : vector<1x64xf32> to vector<8x64xf32>
    %5 = arith.addf %2, %4 : vector<8x64xf32>
    %cst_5 = arith.constant 5.000000e-01 : f32
    %6 = vector.broadcast %cst_5 : f32 to vector<8x64xf32>
    %7 = arith.mulf %6, %5 : vector<8x64xf32>
    %8 = math.tanh %7 : vector<8x64xf32>
    %cst_6 = arith.constant 5.000000e-01 : f32
    %9 = vector.broadcast %cst_6 : f32 to vector<8x64xf32>
    %10 = arith.mulf %9, %8 : vector<8x64xf32>
    %cst_7 = arith.constant 5.000000e-01 : f32
    %11 = vector.broadcast %cst_7 : f32 to vector<8x64xf32>
    %12 = arith.addf %10, %11 : vector<8x64xf32>
    %c0_8 = arith.constant 0 : index
    %c0_9 = arith.constant 0 : index
    %13 = vector.load %arg3[%c0_8, %c0_9] : memref<8x128xbf16, #tpu.memory_space<vmem>>, vector<8x128xbf16>
    %c0_10 = arith.constant 0 : index
    %c0_11 = arith.constant 0 : index
    %14 = vector.load %arg8[%c0_10, %c0_11] : memref<128x64xbf16, #tpu.memory_space<vmem>>, vector<128x64xbf16>
    %cst_12 = arith.constant dense<0.000000e+00> : vector<8x64xf32>
    %15 = tpu.matmul %13, %14, %cst_12 {dimension_numbers = #tpu.dot_dimension_numbers<[1], [0], [0], [1], [0, 0, 1, 1], [], []>} : vector<8x128xbf16>, vector<128x64xbf16>, vector<8x64xf32> -> vector<8x64xf32>
    %c0_13 = arith.constant 0 : index
    %c0_14 = arith.constant 0 : index
    %16 = vector.load %arg9[%c0_13, %c0_14] : memref<1x64xf32, #tpu.memory_space<vmem>>, vector<1x64xf32>
    %17 = vector.broadcast %16 : vector<1x64xf32> to vector<8x64xf32>
    %18 = arith.addf %15, %17 : vector<8x64xf32>
    %cst_15 = arith.constant 5.000000e-01 : f32
    %19 = vector.broadcast %cst_15 : f32 to vector<8x64xf32>
    %20 = arith.mulf %19, %18 : vector<8x64xf32>
    %21 = math.tanh %20 : vector<8x64xf32>
    %cst_16 = arith.constant 5.000000e-01 : f32
    %22 = vector.broadcast %cst_16 : f32 to vector<8x64xf32>
    %23 = arith.mulf %22, %21 : vector<8x64xf32>
    %cst_17 = arith.constant 5.000000e-01 : f32
    %24 = vector.broadcast %cst_17 : f32 to vector<8x64xf32>
    %25 = arith.addf %23, %24 : vector<8x64xf32>
    %c0_18 = arith.constant 0 : index
    %c0_19 = arith.constant 0 : index
    %26 = vector.load %arg4[%c0_18, %c0_19] : memref<8x2xf32, #tpu.memory_space<vmem>>, vector<8x2xf32>
    %27 = vector.extract_strided_slice %26 {offsets = [0, 0], sizes = [8, 1], strides = [1, 1]} : vector<8x2xf32> to vector<8x1xf32>
    %c0_20 = arith.constant 0 : index
    %28 = memref.load %arg1[%c0_20] : memref<4xf32, #tpu.memory_space<smem>>
    %29 = vector.broadcast %28 : f32 to vector<8x1xf32>
    %30 = arith.mulf %27, %29 : vector<8x1xf32>
    %31 = vector.extract_strided_slice %26 {offsets = [0, 1], sizes = [8, 1], strides = [1, 1]} : vector<8x2xf32> to vector<8x1xf32>
    %c1 = arith.constant 1 : index
    %32 = memref.load %arg1[%c1] : memref<4xf32, #tpu.memory_space<smem>>
    %33 = vector.broadcast %32 : f32 to vector<8x1xf32>
    %34 = arith.mulf %31, %33 : vector<8x1xf32>
    %35 = arith.addf %30, %34 : vector<8x1xf32>
    %c2 = arith.constant 2 : index
    %36 = memref.load %arg1[%c2] : memref<4xf32, #tpu.memory_space<smem>>
    %37 = vector.broadcast %36 : f32 to vector<8x1xf32>
    %38 = arith.addf %35, %37 : vector<8x1xf32>
    %cst_21 = arith.constant 5.000000e-01 : f32
    %39 = vector.broadcast %cst_21 : f32 to vector<8x1xf32>
    %40 = arith.mulf %39, %38 : vector<8x1xf32>
    %41 = math.tanh %40 : vector<8x1xf32>
    %cst_22 = arith.constant 5.000000e-01 : f32
    %42 = vector.broadcast %cst_22 : f32 to vector<8x1xf32>
    %43 = arith.mulf %42, %41 : vector<8x1xf32>
    %cst_23 = arith.constant 5.000000e-01 : f32
    %44 = vector.broadcast %cst_23 : f32 to vector<8x1xf32>
    %45 = arith.addf %43, %44 : vector<8x1xf32>
    %46 = arith.subf %12, %25 : vector<8x64xf32>
    %47 = vector.broadcast %45 : vector<8x1xf32> to vector<8x64xf32>
    %48 = arith.mulf %47, %46 : vector<8x64xf32>
    %c0_24 = arith.constant 0 : index
    %c0_25 = arith.constant 0 : index
    %49 = vector.load %arg5[%c0_24, %c0_25] : memref<8x64xf32, #tpu.memory_space<vmem>>, vector<8x64xf32>
    %50 = arith.mulf %48, %49 : vector<8x64xf32>
    %51 = arith.truncf %50 : vector<8x64xf32> to vector<8x64xbf16>
    %c0_26 = arith.constant 0 : index
    %c0_27 = arith.constant 0 : index
    %52 = vector.load %arg10[%c0_26, %c0_27] : memref<64x512xbf16, #tpu.memory_space<vmem>>, vector<64x512xbf16>
    %cst_28 = arith.constant dense<0.000000e+00> : vector<8x512xf32>
    %53 = tpu.matmul %51, %52, %cst_28 {dimension_numbers = #tpu.dot_dimension_numbers<[1], [0], [0], [1], [0, 0, 1, 1], [], []>} : vector<8x64xbf16>, vector<64x512xbf16>, vector<8x512xf32> -> vector<8x512xf32>
    %c0_29 = arith.constant 0 : index
    %c0_30 = arith.constant 0 : index
    %54 = vector.load %arg11[%c0_29, %c0_30] : memref<1x512xf32, #tpu.memory_space<vmem>>, vector<1x512xf32>
    %55 = vector.broadcast %54 : vector<1x512xf32> to vector<8x512xf32>
    %56 = arith.addf %53, %55 : vector<8x512xf32>
    %cst_31 = arith.constant 5.000000e-01 : f32
    %57 = vector.broadcast %cst_31 : f32 to vector<8x512xf32>
    %58 = arith.mulf %57, %56 : vector<8x512xf32>
    %59 = math.tanh %58 : vector<8x512xf32>
    %cst_32 = arith.constant 5.000000e-01 : f32
    %60 = vector.broadcast %cst_32 : f32 to vector<8x512xf32>
    %61 = arith.mulf %60, %59 : vector<8x512xf32>
    %cst_33 = arith.constant 5.000000e-01 : f32
    %62 = vector.broadcast %cst_33 : f32 to vector<8x512xf32>
    %63 = arith.addf %61, %62 : vector<8x512xf32>
    %64 = arith.truncf %63 : vector<8x512xf32> to vector<8x512xbf16>
    %c0_34 = arith.constant 0 : index
    %c0_35 = arith.constant 0 : index
    %65 = vector.load %arg12[%c0_34, %c0_35] : memref<512x256xbf16, #tpu.memory_space<vmem>>, vector<512x256xbf16>
    %cst_36 = arith.constant dense<0.000000e+00> : vector<8x256xf32>
    %66 = tpu.matmul %64, %65, %cst_36 {dimension_numbers = #tpu.dot_dimension_numbers<[1], [0], [0], [1], [0, 0, 1, 1], [], []>} : vector<8x512xbf16>, vector<512x256xbf16>, vector<8x256xf32> -> vector<8x256xf32>
    %c0_37 = arith.constant 0 : index
    %c0_38 = arith.constant 0 : index
    %67 = vector.load %arg13[%c0_37, %c0_38] : memref<1x256xf32, #tpu.memory_space<vmem>>, vector<1x256xf32>
    %68 = vector.broadcast %67 : vector<1x256xf32> to vector<8x256xf32>
    %69 = arith.addf %66, %68 : vector<8x256xf32>
    %cst_39 = arith.constant 5.000000e-01 : f32
    %70 = vector.broadcast %cst_39 : f32 to vector<8x256xf32>
    %71 = arith.mulf %70, %69 : vector<8x256xf32>
    %72 = math.tanh %71 : vector<8x256xf32>
    %cst_40 = arith.constant 5.000000e-01 : f32
    %73 = vector.broadcast %cst_40 : f32 to vector<8x256xf32>
    %74 = arith.mulf %73, %72 : vector<8x256xf32>
    %cst_41 = arith.constant 5.000000e-01 : f32
    %75 = vector.broadcast %cst_41 : f32 to vector<8x256xf32>
    %76 = arith.addf %74, %75 : vector<8x256xf32>
    %77 = arith.truncf %76 : vector<8x256xf32> to vector<8x256xbf16>
    %c0_42 = arith.constant 0 : index
    %c0_43 = arith.constant 0 : index
    %78 = vector.load %arg14[%c0_42, %c0_43] : memref<256x1xbf16, #tpu.memory_space<vmem>>, vector<256x1xbf16>
    %cst_44 = arith.constant dense<0.000000e+00> : vector<8x1xf32>
    %79 = tpu.matmul %77, %78, %cst_44 {dimension_numbers = #tpu.dot_dimension_numbers<[1], [0], [0], [1], [0, 0, 1, 1], [], []>} : vector<8x256xbf16>, vector<256x1xbf16>, vector<8x1xf32> -> vector<8x1xf32>
    %c3 = arith.constant 3 : index
    %80 = memref.load %arg1[%c3] : memref<4xf32, #tpu.memory_space<smem>>
    %81 = vector.broadcast %80 : f32 to vector<8x1xf32>
    %82 = arith.addf %79, %81 : vector<8x1xf32>
    %cst_45 = arith.constant 5.000000e-01 : f32
    %83 = vector.broadcast %cst_45 : f32 to vector<8x1xf32>
    %84 = arith.mulf %83, %82 : vector<8x1xf32>
    %85 = math.tanh %84 : vector<8x1xf32>
    %cst_46 = arith.constant 5.000000e-01 : f32
    %86 = vector.broadcast %cst_46 : f32 to vector<8x1xf32>
    %87 = arith.mulf %86, %85 : vector<8x1xf32>
    %cst_47 = arith.constant 5.000000e-01 : f32
    %88 = vector.broadcast %cst_47 : f32 to vector<8x1xf32>
    %89 = arith.addf %87, %88 : vector<8x1xf32>
    %90 = tpu.transpose %89, [1, 0] : vector<8x1xf32> -> vector<1x8xf32>
    %c0_48 = arith.constant 0 : index
    %c0_49 = arith.constant 0 : index
    %91 = vector.load %arg15[%c0_48, %c0_49] : memref<1x8xf32, #tpu.memory_space<vmem>>, vector<1x8xf32>
    tpu.vector_store %arg15[%c0_48, %c0_49], %90 {strides = array<i32>} : memref<1x8xf32, #tpu.memory_space<vmem>>, vector<1x8xf32>,
    return
  }
  func.func @transform_0(%arg0: i32, %arg1: memref<4xf32, #tpu.memory_space<smem>>) -> (i32, i32) {
    %c0_i32 = arith.constant 0 : i32
    %c0_i32_0 = arith.constant 0 : i32
    return %arg0, %c0_i32 : i32, i32
  }
  func.func @transform_1(%arg0: i32, %arg1: memref<4xf32, #tpu.memory_space<smem>>) -> (i32, i32) {
    %c0_i32 = arith.constant 0 : i32
    %c0_i32_0 = arith.constant 0 : i32
    return %arg0, %c0_i32 : i32, i32
  }
  func.func @transform_2(%arg0: i32, %arg1: memref<4xf32, #tpu.memory_space<smem>>) -> (i32, i32) {
    %c0_i32 = arith.constant 0 : i32
    %c0_i32_0 = arith.constant 0 : i32
    return %arg0, %c0_i32 : i32, i32
  }
  func.func @transform_3(%arg0: i32, %arg1: memref<4xf32, #tpu.memory_space<smem>>) -> (i32, i32) {
    %c0_i32 = arith.constant 0 : i32
    %c0_i32_0 = arith.constant 0 : i32
    return %arg0, %c0_i32 : i32, i32
  }
  func.func @transform_4(%arg0: i32, %arg1: memref<4xf32, #tpu.memory_space<smem>>) -> (i32, i32) {
    %c0_i32 = arith.constant 0 : i32
    %c0_i32_0 = arith.constant 0 : i32
    %c0_i32_1 = arith.constant 0 : i32
    return %c0_i32, %c0_i32_0 : i32, i32
  }
  func.func @transform_5(%arg0: i32, %arg1: memref<4xf32, #tpu.memory_space<smem>>) -> (i32, i32) {
    %c0_i32 = arith.constant 0 : i32
    %c0_i32_0 = arith.constant 0 : i32
    %c0_i32_1 = arith.constant 0 : i32
    return %c0_i32, %c0_i32_0 : i32, i32
  }
  func.func @transform_6(%arg0: i32, %arg1: memref<4xf32, #tpu.memory_space<smem>>) -> (i32, i32) {
    %c0_i32 = arith.constant 0 : i32
    %c0_i32_0 = arith.constant 0 : i32
    %c0_i32_1 = arith.constant 0 : i32
    return %c0_i32, %c0_i32_0 : i32, i32
  }
  func.func @transform_7(%arg0: i32, %arg1: memref<4xf32, #tpu.memory_space<smem>>) -> (i32, i32) {
    %c0_i32 = arith.constant 0 : i32
    %c0_i32_0 = arith.constant 0 : i32
    %c0_i32_1 = arith.constant 0 : i32
    return %c0_i32, %c0_i32_0 : i32, i32
  }
  func.func @transform_8(%arg0: i32, %arg1: memref<4xf32, #tpu.memory_space<smem>>) -> (i32, i32) {
    %c0_i32 = arith.constant 0 : i32
    %c0_i32_0 = arith.constant 0 : i32
    %c0_i32_1 = arith.constant 0 : i32
    return %c0_i32, %c0_i32_0 : i32, i32
  }
  func.func @transform_9(%arg0: i32, %arg1: memref<4xf32, #tpu.memory_space<smem>>) -> (i32, i32) {
    %c0_i32 = arith.constant 0 : i32
    %c0_i32_0 = arith.constant 0 : i32
    %c0_i32_1 = arith.constant 0 : i32
    return %c0_i32, %c0_i32_0 : i32, i32
  }
  func.func @transform_10(%arg0: i32, %arg1: memref<4xf32, #tpu.memory_space<smem>>) -> (i32, i32) {
    %c0_i32 = arith.constant 0 : i32
    %c0_i32_0 = arith.constant 0 : i32
    %c0_i32_1 = arith.constant 0 : i32
    return %c0_i32, %c0_i32_0 : i32, i32
  }
  func.func @transform_11(%arg0: i32, %arg1: memref<4xf32, #tpu.memory_space<smem>>) -> (i32, i32) {
    %c0_i32 = arith.constant 0 : i32
    %c0_i32_0 = arith.constant 0 : i32
    %c0_i32_1 = arith.constant 0 : i32
    return %c0_i32, %c0_i32_0 : i32, i32
  }
  func.func @transform_12(%arg0: i32, %arg1: memref<4xf32, #tpu.memory_space<smem>>) -> (i32, i32) {
    %c0_i32 = arith.constant 0 : i32
    %c0_i32_0 = arith.constant 0 : i32
    %c0_i32_1 = arith.constant 0 : i32
    return %c0_i32, %c0_i32_0 : i32, i32
  }
  func.func @transform_13(%arg0: i32, %arg1: memref<4xf32, #tpu.memory_space<smem>>) -> (i32, i32) {
    %c0_i32 = arith.constant 0 : i32
    %c0_i32_0 = arith.constant 0 : i32
    return %c0_i32, %arg0 : i32, i32
  }
}

</mosaic_0001>

<bundles_post_ra>
// kernel: tpu_custom_call.1
= control target key start
LH: loop header
LB: loop body
LE: loop exit
PB: predicated region body
PF: predicated region fallthrough
CT: control target
= control target key end

     0   :  { %s1785_s16 = smov [#allocation3]   ;;  %s2091_s0 = inlined_call_operand.vmem [shape: f32[4], index: 0, kind: input, shape index: {}]   ;;  %s2092_s1 = inlined_call_operand.vmem [shape: bf16[8,64], index: 1, kind: input, shape index: {}]   ;;  %s2093_s2 = inlined_call_operand.vmem [shape: bf16[8,128], index: 2, kind: input, shape index: {}]   ;;  %s2094_s3 = inlined_call_operand.vmem [shape: f32[8,2], index: 3, kind: input, shape index: {}]   ;;  %s2095_s4 = inlined_call_operand.vmem [shape: f32[8,64], index: 4, kind: input, shape index: {}]   ;;  %s2096_s5 = inlined_call_operand.vmem [shape: bf16[64,64], index: 5, kind: input, shape index: {}]   ;;  %s2097_s6 = inlined_call_operand.vmem [shape: f32[1,64], index: 6, kind: input, shape index: {}]   ;;  %s2098_s7 = inlined_call_operand.vmem [shape: bf16[128,64], index: 7, kind: input, shape index: {}]   ;;  %s2099_s8 = inlined_call_operand.vmem [shape: f32[1,64], index: 8, kind: input, shape index: {}]   ;;  %s2100_s9 = inlined_call_operand.vmem [shape: bf16[64,512], index: 9, kind: input, shape index: {}]   ;;  %s2101_s10 = inlined_call_operand.vmem [shape: f32[1,512], index: 10, kind: input, shape index: {}]   ;;  %s2102_s11 = inlined_call_operand.hbm [shape: bf16[512,256], index: 11, kind: input, shape index: {}]   ;;  %s2103_s12 = inlined_call_operand.vmem [shape: f32[1,256], index: 12, kind: input, shape index: {}]   ;;  %s2104_s13 = inlined_call_operand.vmem [shape: bf16[256,1], index: 13, kind: input, shape index: {}]   ;;  %s2105_s14 = inlined_call_operand.hbm [shape: f32[1,8], index: 14, kind: output, shape index: {}]  }
   0x1   :  { %s20_s15 = sshll.u32 %s2091_s0, 4  ;;  %s21_s15 = int_to_ptr.vmem [resolvable:$true] %s20_s15 }
   0x2   :  { %23 = dma.vmem_to_smem %s21_s15, 16, %s1785_s16, [#allocation2] }
   0x3   :  { %1779 = dma.done.wait [#allocation2], 16 }
   0x4   :  { %1780 = vsyncadd [#allocation2], 4294967280 }
   0x5   :  { %26 = sfence }
   0x6   :  { %27 = vsyncpa [#allocation5], 0 }
   0x7   :  { %28 = vsyncpa [#allocation6], 0  ;;  %s53_s19 = sshll.u32 %s2102_s11, 4  ;;  %s1786_s20 = smov [#allocation4]   ;;  %s54_s19 = int_to_ptr.hbm [resolvable:$true] %s53_s19 }
   0x8   :  { %s55_s21 = sshll.u32 %s1786_s20, 4  ;;  %s1787_s22 = smov 128   ;;  %s56_s21 = int_to_ptr.vmem [resolvable:$true] %s55_s21 }
   0x9   :  { %s1788_s23 = smov 8  }
   0xa   :  { %61 = dma.hbm_to_vmem [thread:$0]  %s54_s19, 8192, %s56_s21, [#allocation5], %s1787_s22, %s1787_s22, %s1788_s23  }
   0xb   :  { %1781 = dma.done.wait [#allocation5], 8192  }
   0xc   :  { %1782 = vsyncadd [#allocation5], 4294959104  ;;  %s1189_s0 = sld [smem:[#allocation3 + $0x1]]  ;;  %v215_v0 = vld [vmem:[%s2094_s3] sm:$0xff]  ;;  %v1583_v2 = vld [vmem:[%s2096_s5 + $0x18] sm:$0xff]  ;;  %s1789_s29 = smov 127  }
   0xd   :  { %116 = vmatpush.bf16.msra.mxu1 %v1583_v2  ;;  %v1582_v4 = vld [vmem:[%s2096_s5 + $0x10] sm:$0xff]  ;;  %v1581_v5 = vld [vmem:[%s2096_s5 + $0x8] sm:$0xff]  ;;  %v1580_v6 = vld [vmem:[%s2096_s5] sm:$0xff]  ;;  %vm108_vm0 = vcmask 523264   ;;  %v1790_v17 = vmov 0   ;;  %s216_s16 = sld [smem:[#allocation3]] }
   0xe   :  { %v1591_v7 = vld [vmem:[%s2098_s7 + $0x38] sm:$0xff]  ;;  %v71_v8 = vld [vmem:[%s2092_s1] sm:$0xf]  ;;  %v1590_v9 = vld [vmem:[%s2098_s7 + $0x30] sm:$0xff]  ;;  %1696 = vset.pattern.permute.xlu0 %v1790_v17  ;;  %s1190_s17 = sld [smem:[#allocation3 + $0x2]]  ;;  %s1791_s18 = smov [#allocation7]  }
   0xf   :  { %v1589_v10 = vld [vmem:[%s2098_s7 + $0x28] sm:$0xff]  ;;  %v1588_v11 = vld [vmem:[%s2098_s7 + $0x20] sm:$0xff]  ;;  %v1587_v12 = vld [vmem:[%s2098_s7 + $0x18] sm:$0xff]  ;;  %s1130_s21 = sshll.u32 %s2105_s14, 4  ;;  %vm1121_vm1 = vcmask 57344   ;;  %s1131_s21 = int_to_ptr.hbm [resolvable:$true] %s1130_s21 }
  0x10   :  { %v1586_v13 = vld [vmem:[%s2098_s7 + $0x10] sm:$0xff]  ;;  %v1585_v14 = vld [vmem:[%s2098_s7 + $0x8] sm:$0xff]  ;;  %v1584_v15 = vld [vmem:[%s2098_s7] sm:$0xff] }
  0x11   :  { %117 = vmatpush.bf16.msra.mxu1 %v1582_v4  ;;  %v129_v16 = vld [vmem:[%s2093_s2] sm:$0xf]  ;;  %v1606_v31 = vld [vmem:[%s2100_s9 + $0x6c] sm:$0xf0]  ;;  %v1604_v32 = vld [vmem:[%s2100_s9 + $0x64] sm:$0xf] }
  0x12   :  { %v220_v1 = vstv %s1189_s0  ;;  %v1241_v30 = vld [vmem:[%s2100_s9 + $0x60] sm:$0xf]  ;;  %v1243_v34 = vld [vmem:[%s2100_s9 + $0x70] sm:$0xf0]  ;;  %v1249_v35 = vld [vmem:[%s2100_s9 + $0x68] sm:$0xf] }
  0x13   :  { %v221_v3 = vmul.f32 %v220_v1, %v215_v0  ;;  %v217_v18 = vstv %s216_s16  ;;  %v1242_v33 = vor.u32 %v1606_v31, %v1241_v30  ;;  %v1246_v36 = vor.u32 %v1604_v32, %v1243_v34  ;;  %v1607_v37 = vld [vmem:[%s2100_s9 + $0x74] sm:$0xf0]  ;;  %v1225_v38 = vld [vmem:[%s2100_s9 + $0x40] sm:$0xf]  ;;  %v1602_v39 = vld [vmem:[%s2100_s9 + $0x4c] sm:$0xf0] }
  0x14   :  { %v218_v19 = vmul.f32 %v217_v18, %v215_v0  ;;  %v228_v20 = vstv %s1190_s17  ;;  %v1250_v40 = vor.u32 %v1607_v37, %v1249_v35  ;;  %v1226_v41 = vor.u32 %v1602_v39, %v1225_v38  ;;  %v1600_v42 = vld [vmem:[%s2100_s9 + $0x44] sm:$0xf]  ;;  %v1227_v43 = vld [vmem:[%s2100_s9 + $0x50] sm:$0xf0]  ;;  %v1233_v45 = vld [vmem:[%s2100_s9 + $0x48] sm:$0xf] }
  0x15   :  { %223 = vrot.lane.b32.xlu0 %v221_v3, %s1789_s29  ;;  %118 = vmatpush.bf16.msra.mxu1 %v1581_v5  ;;  %v1230_v44 = vor.u32 %v1600_v42, %v1227_v43  ;;  %v1603_v46 = vld [vmem:[%s2100_s9 + $0x54] sm:$0xf0]  ;;  %v1209_v47 = vld [vmem:[%s2100_s9 + $0x20] sm:$0xf]  ;;  %v1598_v49 = vld [vmem:[%s2100_s9 + $0x2c] sm:$0xf0] }
  0x16   :  { %357 = vmatpush.bf16.msra.mxu2 %v1242_v33  ;;  %370 = vmatpush.bf16.msra.mxu3 %v1246_v36  ;;  %v1234_v48 = vor.u32 %v1603_v46, %v1233_v45  ;;  %v1596_v50 = vld [vmem:[%s2100_s9 + $0x24] sm:$0xf]  ;;  %v1211_v51 = vld [vmem:[%s2100_s9 + $0x30] sm:$0xf0]  ;;  %v1217_v52 = vld [vmem:[%s2100_s9 + $0x28] sm:$0xf]  ;;  %v1210_v54 = vor.u32 %v1598_v49, %v1209_v47 }
  0x17   :  { %383 = vmatpush.bf16.msra.mxu0 %v1250_v40  ;;  %v1599_v53 = vld [vmem:[%s2100_s9 + $0x34] sm:$0xf0]  ;;  %v1214_v55 = vor.u32 %v1596_v50, %v1211_v51  ;;  %v1697_v59 = vld [vmem:[%s2097_s6] ss:$0 sm:$0xff]  ;;  %v1594_v62 = vld [vmem:[%s2100_s9 + $0xc] sm:$0xf0] }
  0x18   :  { %v1218_v56 = vor.u32 %v1599_v53, %v1217_v52  ;;  %v1698_v60 = vld [vmem:[%s2099_s8] ss:$0 sm:$0xff]  ;;  %v1592_v63 = vld [vmem:[%s2100_s9 + $0x4] sm:$0xf]  ;;  %v1195_v1 = vld [vmem:[%s2100_s9 + $0x10] sm:$0xf0] }
  0x19   :  { %119 = vmatpush.bf16.msra.mxu1 %v1580_v6  ;;  %v1193_v61 = vld [vmem:[%s2100_s9] sm:$0xf]  ;;  %v1201_v2 = vld [vmem:[%s2100_s9 + $0x8] sm:$0xf]  ;;  %v1595_v3 = vld [vmem:[%s2100_s9 + $0x14] sm:$0xf0]  ;;  %v1198_v5 = vor.u32 %v1592_v63, %v1195_v1 }
  0x1a   :  { %358 = vmatpush.bf16.msra.mxu2 %v1226_v41  ;;  %371 = vmatpush.bf16.msra.mxu3 %v1230_v44  ;;  %v1194_v0 = vor.u32 %v1594_v62, %v1193_v61  ;;  %v1202_v6 = vor.u32 %v1595_v3, %v1201_v2  ;;  %v1219_v17 = vld [vmem:[%s2100_s9 + $0x38] sm:$0xf0]  ;;  %v1653_v30 = vld [vmem:[#allocation4 + $0x164] sm:$0xf0]  ;;  %v1317_v31 = vld [vmem:[#allocation4 + $0x70] sm:$0xf] }
  0x1b   :  { %384 = vmatpush.bf16.msra.mxu0 %v1234_v48  ;;  %v1623_v32 = vld [vmem:[#allocation4 + $0x74] sm:$0xf0]  ;;  %v1381_v36 = vld [vmem:[#allocation4 + $0xf0] sm:$0xf]  ;;  %v1309_v41 = vld [vmem:[#allocation4 + $0x60] sm:$0xf] }
  0x1c   :  { %1156 = vmatmul.msk.bf16.vlgmr.msra.gmra.mxu1 %vm108_vm0, %v71_v8  ;;  %v1605_v8 = vld [vmem:[%s2100_s9 + $0x6c] sm:$0xf]  ;;  %v1318_v35 = vor.u32 %v1623_v32, %v1317_v31  ;;  %v1639_v37 = vld [vmem:[#allocation4 + $0xf4] sm:$0xf0]  ;;  %v1429_v40 = vld [vmem:[#allocation4 + $0x150] sm:$0xf] }
  0x1d   :  { %198 = vmatpush.bf16.msrb.mxu1 %v1591_v7  ;;  %v1382_v39 = vor.u32 %v1639_v37, %v1381_v36  ;;  %v1621_v42 = vld [vmem:[#allocation4 + $0x64] sm:$0xf0]  ;;  %v1651_v43 = vld [vmem:[#allocation4 + $0x154] sm:$0xf0]  ;;  %v1373_v45 = vld [vmem:[#allocation4 + $0xe0] sm:$0xf] }
  0x1e   :  { %359 = vmatpush.bf16.msra.mxu2 %v1210_v54  ;;  %372 = vmatpush.bf16.msra.mxu3 %v1214_v55  ;;  %v1310_v44 = vor.u32 %v1621_v42, %v1309_v41  ;;  %v1637_v46 = vld [vmem:[#allocation4 + $0xe4] sm:$0xf0]  ;;  %v1301_v48 = vld [vmem:[#allocation4 + $0x50] sm:$0xf]  ;;  %v1619_v49 = vld [vmem:[#allocation4 + $0x54] sm:$0xf0]  ;;  %v1430_v52 = vor.u32 %v1651_v43, %v1429_v40 }
  0x1f   :  { %385 = vmatpush.bf16.msra.mxu0 %v1218_v56  ;;  %v1374_v47 = vor.u32 %v1637_v46, %v1373_v45  ;;  %v1365_v50 = vld [vmem:[#allocation4 + $0xd0] sm:$0xf]  ;;  %v1635_v51 = vld [vmem:[#allocation4 + $0xd4] sm:$0xf0]  ;;  %v1421_v54 = vld [vmem:[#allocation4 + $0x140] sm:$0xf]  ;;  %v1302_v56 = vor.u32 %v1619_v49, %v1301_v48 }
  0x20   :  { %v1649_v55 = vld [vmem:[#allocation4 + $0x144] sm:$0xf0]  ;;  %v1293_v61 = vld [vmem:[#allocation4 + $0x40] sm:$0xf]  ;;  %v1509_v2 = vld [vmem:[#allocation4 + $0x1f0] sm:$0xf] }
  0x21   :  { %199 = vmatpush.bf16.msrb.mxu1 %v1590_v9  ;;  %v1251_v9 = vld [vmem:[%s2100_s9 + $0x78] sm:$0xf0]  ;;  %v1617_v62 = vld [vmem:[#allocation4 + $0x44] sm:$0xf0]  ;;  %v1357_v63 = vld [vmem:[#allocation4 + $0xc0] sm:$0xf] }
  0x22   :  { %360 = vmatpush.bf16.msra.mxu2 %v1194_v0  ;;  %373 = vmatpush.bf16.msra.mxu3 %v1198_v5  ;;  %v1422_v0 = vor.u32 %v1649_v55, %v1421_v54  ;;  %v1633_v1 = vld [vmem:[#allocation4 + $0xc4] sm:$0xf0]  ;;  %v1671_v3 = vld [vmem:[#allocation4 + $0x1f4] sm:$0xf0]  ;;  %v1413_v5 = vld [vmem:[#allocation4 + $0x130] sm:$0xf] }
  0x23   :  { %386 = vmatpush.bf16.msra.mxu0 %v1202_v6  ;;  %v1647_v6 = vld [vmem:[#allocation4 + $0x134] sm:$0xf0]  ;;  %v1654_v36 = vld [vmem:[#allocation4 + $0x174] sm:$0xf]  ;;  %v1447_v37 = vld [vmem:[#allocation4 + $0x178] sm:$0xf0] }
  0x24   :  { %v1611_v40 = vld [vmem:[#allocation4 + $0x14] sm:$0xf0]  ;;  %v1333_v41 = vld [vmem:[#allocation4 + $0x90] sm:$0xf]  ;;  %v1652_v48 = vld [vmem:[#allocation4 + $0x164] sm:$0xf] }
  0x25   :  { %200 = vmatpush.bf16.msrb.mxu1 %v1589_v10  ;;  %v1627_v43 = vld [vmem:[#allocation4 + $0x94] sm:$0xf0]  ;;  %v1439_v49 = vld [vmem:[#allocation4 + $0x168] sm:$0xf0]  ;;  %v1325_v54 = vld [vmem:[#allocation4 + $0x80] sm:$0xf] }
  0x26   :  { %815 = vmatpush.bf16.msrb.mxu3 %v1318_v35  ;;  %v1667_v45 = vld [vmem:[#allocation4 + $0x1d4] sm:$0xf0]  ;;  %v1334_v46 = vor.u32 %v1627_v43, %v1333_v41  ;;  %v1625_v55 = vld [vmem:[#allocation4 + $0x84] sm:$0xf0]  ;;  %v1453_v41 = vld [vmem:[#allocation4 + $0x180] sm:$0xf] }
  0x27   :  { %828 = vmatpush.bf16.msrb.mxu0 %v1382_v39  ;;  %v1269_v39 = vld [vmem:[#allocation4 + $0x10] sm:$0xf]  ;;  %s1128_s8 = sshll.u32 %s1791_s18, 4  ;;  %s1129_s8 = int_to_ptr.vmem [resolvable:$true] %s1128_s8 }
  0x28   :  { %v1270_v42 = vor.u32 %v1611_v40, %v1269_v39  ;;  %v1407_v39 = vld [vmem:[#allocation4 + $0x128] sm:$0xf0] }
  0x29   :  { %201 = vmatpush.bf16.msrb.mxu1 %v1588_v11  ;;  %v1254_v11 = vor.u32 %v1605_v8, %v1251_v9  ;;  %v1358_v9 = vor.u32 %v1633_v1, %v1357_v63  ;;  %v1638_v63 = vld [vmem:[#allocation4 + $0xf4] sm:$0xf] }
  0x2a   :  { %816 = vmatpush.bf16.msrb.mxu3 %v1310_v44  ;;  %v1493_v44 = vld [vmem:[#allocation4 + $0x1d0] sm:$0xf]  ;;  %v1650_v1 = vld [vmem:[#allocation4 + $0x154] sm:$0xf] }
  0x2b   :  { %396 = vmatpush.bf16.msrb.mxu2 %v1254_v11  ;;  %829 = vmatpush.bf16.msrb.mxu0 %v1374_v47  ;;  %v1615_v11 = vld [vmem:[#allocation4 + $0x34] sm:$0xf0]  ;;  %v1494_v47 = vor.u32 %v1667_v45, %v1493_v44  ;;  %v1614_v44 = vld [vmem:[#allocation4 + $0x34] sm:$0xf]  ;;  %v1287_v45 = vld [vmem:[#allocation4 + $0x38] sm:$0xf0] }
  0x2d   :  { %202 = vmatpush.bf16.msrb.mxu1 %v1587_v12 }
  0x2e   :  { %817 = vmatpush.bf16.msrb.mxu3 %v1302_v56  ;;  %v1485_v56 = vld [vmem:[#allocation4 + $0x1c0] sm:$0xf] }
  0x31   :  { %203 = vmatpush.bf16.msrb.mxu1 %v1586_v13  ;;  %v1601_v13 = vld [vmem:[%s2100_s9 + $0x4c] sm:$0xf] }
  0x35   :  { %204 = vmatpush.bf16.msrb.mxu1 %v1585_v14  ;;  %v1235_v14 = vld [vmem:[%s2100_s9 + $0x58] sm:$0xf0] }
  0x39   :  { %205 = vmatpush.bf16.msrb.mxu1 %v1584_v15  ;;  %v1238_v15 = vor.u32 %v1601_v13, %v1235_v14  ;;  %v1414_v13 = vor.u32 %v1647_v6, %v1413_v5  ;;  %v1349_v14 = vld [vmem:[#allocation4 + $0xb0] sm:$0xf]  ;;  %v1663_v5 = vld [vmem:[#allocation4 + $0x1b4] sm:$0xf0] }
  0x3b   :  { %397 = vmatpush.bf16.msrb.mxu2 %v1238_v15  ;;  %v1631_v15 = vld [vmem:[#allocation4 + $0xb4] sm:$0xf0] }
  0x3c   :  { %206 = vmatmul.bf16.vlgmr.msrb.gmra.mxu1 %v129_v16  ;;  %v1597_v16 = vld [vmem:[%s2100_s9 + $0x2c] sm:$0xf] }
  0x3d   :  { %v1222_v18 = vor.u32 %v1597_v16, %v1219_v17  ;;  %v1405_v16 = vld [vmem:[#allocation4 + $0x120] sm:$0xf]  ;;  %v1645_v17 = vld [vmem:[#allocation4 + $0x124] sm:$0xf0] }
  0x3f   :  { %398 = vmatpush.bf16.msrb.mxu2 %v1222_v18 }
  0x87   :  { %v224_v21 = vpop.permute.xlu0 %223 }
  0x88   :  { %v226_v22 = vadd.f32 %v224_v21, %v218_v19  ;;  %v1593_v19 = vld [vmem:[%s2100_s9 + $0xc] sm:$0xf] }
  0x8a   :  { %v229_v23 = vadd.f32 %v228_v20, %v226_v22  ;;  %v1203_v20 = vld [vmem:[%s2100_s9 + $0x18] sm:$0xf0] }
  0x8b   :  { %v1206_v22 = vor.u32 %v1593_v19, %v1203_v20  ;;  %v1350_v19 = vor.u32 %v1631_v15, %v1349_v14  ;;  %v1406_v20 = vor.u32 %v1645_v17, %v1405_v16  ;;  %v1648_v14 = vld [vmem:[#allocation4 + $0x144] sm:$0xf]  ;;  %v1423_v15 = vld [vmem:[#allocation4 + $0x148] sm:$0xf0]  ;;  %v1469_v17 = vld [vmem:[#allocation4 + $0x1a0] sm:$0xf] }
  0x8c   :  { %v230_v24 = vmul.f32 0.5, %v229_v23  ;;  %v1426_v16 = vor.u32 %v1648_v14, %v1423_v15 }
  0x8d   :  { %399 = vmatpush.bf16.msrb.mxu2 %v1206_v22  ;;  %v1643_v22 = vld [vmem:[#allocation4 + $0x114] sm:$0xf0] }
  0x8e   :  { %1699 = vtanh.f32 %v230_v24 }
  0x94   :  { %v1700_v25 = vpop.eup %1699 }
  0x95   :  { %v232_v26 = vmul.f32 0.5, %v1700_v25 }
  0x97   :  { %v233_v27 = vadd.f32 0.5, %v232_v26  ;;  %v1445_v26 = vld [vmem:[#allocation4 + $0x170] sm:$0xf] }
  0x99   :  { %237 = vperm.xlu0 %1696, %v233_v27   ;;  %v121_v28 = vpop.f32.mrf.mxu1  ;;  %v1655_v27 = vld [vmem:[#allocation4 + $0x174] sm:$0xf0] }
  0x9a   :  { %v122_v4 = vadd.f32 %v1697_v59, %v121_v28  ;;  %v1437_v28 = vld [vmem:[#allocation4 + $0x160] sm:$0xf]  ;;  %v1366_v59 = vor.u32 %v1635_v51, %v1365_v50  ;;  %v1442_v50 = vor.u32 %v1652_v48, %v1439_v49  ;;  %v1351_v48 = vld [vmem:[#allocation4 + $0xb8] sm:$0xf0]  ;;  %v1670_v49 = vld [vmem:[#allocation4 + $0x1f4] sm:$0xf] }
  0x9b   :  { %v1438_v38 = vor.u32 %v1653_v30, %v1437_v28  ;;  %v1629_v28 = vld [vmem:[#allocation4 + $0xa4] sm:$0xf0]  ;;  %v1261_v51 = vld [vmem:[#allocation4] sm:$0xf] }
  0x9c   :  { %v125_v10 = vmul.f32 0.5, %v122_v4  ;;  %830 = vmatpush.bf16.msrb.mxu0 %v1366_v59  ;;  %v1669_v30 = vld [vmem:[#allocation4 + $0x1e4] sm:$0xf0]  ;;  %v1622_v59 = vld [vmem:[#allocation4 + $0x74] sm:$0xf] }
  0x9e   :  { %1701 = vtanh.f32 %v125_v10  ;;  %v1285_v10 = vld [vmem:[#allocation4 + $0x30] sm:$0xf] }
  0x9f   :  { %v1286_v18 = vor.u32 %v1615_v11, %v1285_v10  ;;  %v1636_v10 = vld [vmem:[#allocation4 + $0xe4] sm:$0xf] }
  0xa0   :  { %831 = vmatpush.bf16.msrb.mxu0 %v1358_v9  ;;  %v1311_v9 = vld [vmem:[#allocation4 + $0x68] sm:$0xf0] }
  0xa1   :  { %v123_v29 = vpop.f32.mrf.mxu1 }
  0xa2   :  { %v1446_v29 = vor.u32 %v1655_v27, %v1445_v26  ;;  %v1341_v26 = vld [vmem:[#allocation4 + $0xa0] sm:$0xf] }
  0xa3   :  { %v1342_v31 = vor.u32 %v1629_v28, %v1341_v26  ;;  %v1646_v26 = vld [vmem:[#allocation4 + $0x134] sm:$0xf] }
  0xa4   :  { %v1702_v21 = vpop.eup %1701  ;;  %841 = vmatpush.bf16.msra.mxu1 %v1446_v29  ;;  %832 = vmatpush.bf16.msrb.mxu0 %v1350_v19  ;;  %v1501_v29 = vld [vmem:[#allocation4 + $0x1e0] sm:$0xf] }
  0xa5   :  { %v127_v24 = vmul.f32 0.5, %v1702_v21  ;;  %v1397_v21 = vld [vmem:[#allocation4 + $0x110] sm:$0xf]  ;;  %v1502_v32 = vor.u32 %v1669_v30, %v1501_v29  ;;  %v1659_v30 = vld [vmem:[#allocation4 + $0x194] sm:$0xf0] }
  0xa6   :  { %v1461_v29 = vld [vmem:[#allocation4 + $0x190] sm:$0xf] }
  0xa7   :  { %v128_v33 = vadd.f32 0.5, %v127_v24  ;;  %v1277_v24 = vld [vmem:[#allocation4 + $0x20] sm:$0xf] }
  0xa8   :  { %842 = vmatpush.bf16.msra.mxu1 %v1438_v38  ;;  %833 = vmatpush.bf16.msrb.mxu0 %v1342_v31  ;;  %v1450_v38 = vor.u32 %v1654_v36, %v1447_v37  ;;  %v1462_v31 = vor.u32 %v1659_v30, %v1461_v29  ;;  %v1359_v36 = vld [vmem:[#allocation4 + $0xc8] sm:$0xf0] }
  0xac   :  { %843 = vmatpush.bf16.msra.mxu1 %v1430_v52  ;;  %834 = vmatpush.bf16.msrb.mxu0 %v1334_v46  ;;  %v1609_v52 = vld [vmem:[#allocation4 + $0x4] sm:$0xf0]  ;;  %v1630_v46 = vld [vmem:[#allocation4 + $0xb4] sm:$0xf] }
  0xb0   :  { %844 = vmatpush.bf16.msra.mxu1 %v1422_v0  ;;  %v1383_v0 = vld [vmem:[#allocation4 + $0xf8] sm:$0xf0] }
  0xb4   :  { %845 = vmatpush.bf16.msra.mxu1 %v1414_v13 }
  0xb8   :  { %846 = vmatpush.bf16.msra.mxu1 %v1406_v20  ;;  %v1618_v20 = vld [vmem:[#allocation4 + $0x54] sm:$0xf] }
  0xb9   :  { %v207_v57 = vpop.f32.mrf.mxu1 }
  0xba   :  { %v208_v7 = vadd.f32 %v1698_v60, %v207_v57  ;;  %v241_v57 = vld [vmem:[%s2095_s4] sm:$0xff] }
  0xbc   :  { %v211_v12 = vmul.f32 0.5, %v208_v7  ;;  %v1294_v7 = vor.u32 %v1617_v62, %v1293_v61 }
  0xbe   :  { %1703 = vtanh.f32 %v211_v12  ;;  %v1510_v12 = vor.u32 %v1671_v3, %v1509_v2  ;;  %818 = vmatpush.bf16.msrb.mxu3 %v1294_v7  ;;  %v1386_v2 = vor.u32 %v1638_v63, %v1383_v0  ;;  %v1431_v3 = vld [vmem:[#allocation4 + $0x158] sm:$0xf0]  ;;  %v1503_v63 = vld [vmem:[#allocation4 + $0x1e8] sm:$0xf0] }
  0xbf   :  { %v1434_v6 = vor.u32 %v1650_v1, %v1431_v3  ;;  %v1391_v3 = vld [vmem:[#allocation4 + $0x108] sm:$0xf0] }
  0xc1   :  { %v209_v58 = vpop.f32.mrf.mxu1 }
  0xc2   :  { %819 = vmatpush.bf16.msrb.mxu3 %v1286_v18  ;;  %v1661_v18 = vld [vmem:[#allocation4 + $0x1a4] sm:$0xf0] }
  0xc3   :  { %v1470_v19 = vor.u32 %v1661_v18, %v1469_v17 }
  0xc4   :  { %v1704_v23 = vpop.eup %1703 }
  0xc5   :  { %v213_v25 = vmul.f32 0.5, %v1704_v23  ;;  %v1398_v23 = vor.u32 %v1643_v22, %v1397_v21  ;;  %v1303_v21 = vld [vmem:[#allocation4 + $0x58] sm:$0xf0]  ;;  %v1634_v22 = vld [vmem:[#allocation4 + $0xd4] sm:$0xf] }
  0xc7   :  { %v214_v34 = vadd.f32 0.5, %v213_v25  ;;  %847 = vmatpush.bf16.msra.mxu1 %v1398_v23  ;;  %v1613_v25 = vld [vmem:[#allocation4 + $0x24] sm:$0xf0]  ;;  %v1306_v23 = vor.u32 %v1618_v20, %v1303_v21  ;;  %v1263_v20 = vld [vmem:[#allocation4 + $0x8] sm:$0xf0] }
  0xc8   :  { %v1278_v27 = vor.u32 %v1613_v25, %v1277_v24  ;;  %v1367_v24 = vld [vmem:[#allocation4 + $0xd8] sm:$0xf0]  ;;  %v1624_v21 = vld [vmem:[#allocation4 + $0x84] sm:$0xf] }
  0xc9   :  { %v234_v53 = vsub.f32 %v128_v33, %v214_v34  ;;  %v1389_v33 = vld [vmem:[#allocation4 + $0x100] sm:$0xf]  ;;  %v1641_v34 = vld [vmem:[#allocation4 + $0x104] sm:$0xf0]  ;;  %v1370_v25 = vor.u32 %v1634_v22, %v1367_v24  ;;  %v1327_v24 = vld [vmem:[#allocation4 + $0x88] sm:$0xf0] }
  0xca   :  { %820 = vmatpush.bf16.msrb.mxu3 %v1278_v27  ;;  %v1390_v35 = vor.u32 %v1641_v34, %v1389_v33  ;;  %v1415_v27 = vld [vmem:[#allocation4 + $0x138] sm:$0xf0]  ;;  %v1295_v33 = vld [vmem:[#allocation4 + $0x48] sm:$0xf0]  ;;  %v1632_v34 = vld [vmem:[#allocation4 + $0xc4] sm:$0xf] }
  0xcb   :  { %v1418_v28 = vor.u32 %v1646_v26, %v1415_v27  ;;  %v1362_v37 = vor.u32 %v1632_v34, %v1359_v36  ;;  %v1330_v26 = vor.u32 %v1624_v21, %v1327_v24  ;;  %v1487_v27 = vld [vmem:[#allocation4 + $0x1c8] sm:$0xf0]  ;;  %v1479_v34 = vld [vmem:[#allocation4 + $0x1b8] sm:$0xf0]  ;;  %v1684_v21 = vld [vmem:[%s2104_s13 + $0x60] sm:$0xff] }
  0xcc   :  { %848 = vmatpush.bf16.msra.mxu1 %v1390_v35  ;;  %v1683_v24 = vld [vmem:[%s2104_s13 + $0x58] sm:$0xff] }
  0xce   :  { %821 = vmatpush.bf16.msrb.mxu3 %v1270_v42  ;;  %v1657_v42 = vld [vmem:[#allocation4 + $0x184] sm:$0xf0] }
  0xcf   :  { %v1454_v43 = vor.u32 %v1657_v42, %v1453_v41 }
  0xd0   :  { %893 = vmatpush.bf16.msrb.mxu1 %v1450_v38  ;;  %v1644_v38 = vld [vmem:[#allocation4 + $0x124] sm:$0xf] }
  0xd1   :  { %v1410_v40 = vor.u32 %v1644_v38, %v1407_v39  ;;  %v1660_v39 = vld [vmem:[#allocation4 + $0x1a4] sm:$0xf] }
  0xd4   :  { %894 = vmatpush.bf16.msrb.mxu1 %v1442_v50  ;;  %v1511_v50 = vld [vmem:[#allocation4 + $0x1f8] sm:$0xf0] }
  0xd8   :  { %895 = vmatpush.bf16.msrb.mxu1 %v1434_v6  ;;  %v1610_v6 = vld [vmem:[#allocation4 + $0x14] sm:$0xf] }
  0xdc   :  { %896 = vmatpush.bf16.msrb.mxu1 %v1426_v16 }
  0xe0   :  { %897 = vmatpush.bf16.msrb.mxu1 %v1418_v28 }
  0xe4   :  { %898 = vmatpush.bf16.msrb.mxu1 %v1410_v40  ;;  %v1471_v40 = vld [vmem:[#allocation4 + $0x1a8] sm:$0xf0] }
  0xe5   :  { %v1474_v42 = vor.u32 %v1660_v39, %v1471_v40 }
 0x10b   :  { %v238_v58 = vpop.permute.xlu0 %237 }
 0x10c   :  { %v240_v60 = vmul.f32 %v238_v58, %v234_v53  ;;  %v1262_v53 = vor.u32 %v1609_v52, %v1261_v51  ;;  %v1665_v58 = vld [vmem:[#allocation4 + $0x1c4] sm:$0xf0]  ;;  %v1354_v51 = vor.u32 %v1630_v46, %v1351_v48  ;;  %v1514_v52 = vor.u32 %v1670_v49, %v1511_v50 }
 0x10d   :  { %v1486_v61 = vor.u32 %v1665_v58, %v1485_v56  ;;  %v1279_v58 = vld [vmem:[#allocation4 + $0x28] sm:$0xf0] }
 0x10e   :  { %v242_v4 = vmul.f32 %v241_v57, %v240_v60  ;;  %v1326_v57 = vor.u32 %v1625_v55, %v1325_v54  ;;  %v1319_v60 = vld [vmem:[#allocation4 + $0x78] sm:$0xf0]  ;;  %822 = vmatpush.bf16.msrb.mxu3 %v1262_v53  ;;  %v1642_v53 = vld [vmem:[#allocation4 + $0x114] sm:$0xf]  ;;  %v2031_v55 = vld [vmem:[%s2101_s10] sm:$0xf] }
 0x10f   :  { %v1322_v62 = vor.u32 %v1622_v59, %v1319_v60  ;;  %v1399_v54 = vld [vmem:[#allocation4 + $0x118] sm:$0xf0]  ;;  %v1628_v59 = vld [vmem:[#allocation4 + $0xa4] sm:$0xf]  ;;  %v262_v17 = vperm.slane %v2031_v55, 0  ;;  %v263_v18 = vperm.slane %v2031_v55, 1 }
 0x110   :  { %v243_v8 = vpack.c.bf16 %v242_v4, %v242_v4  ;;  %835 = vmatpush.bf16.msrb.mxu0 %v1326_v57  ;;  %v1477_v4 = vld [vmem:[#allocation4 + $0x1b0] sm:$0xf]  ;;  %v1402_v56 = vor.u32 %v1642_v53, %v1399_v54  ;;  %v1612_v57 = vld [vmem:[#allocation4 + $0x24] sm:$0xf]  ;;  %v1455_v53 = vld [vmem:[#allocation4 + $0x188] sm:$0xf0] }
 0x111   :  { %v1478_v7 = vor.u32 %v1663_v5, %v1477_v4  ;;  %v1282_v60 = vor.u32 %v1612_v57, %v1279_v58  ;;  %v264_v4 = vperm.slane %v2031_v55, 2  ;;  %v265_v58 = vperm.slane %v2031_v55, 3  ;;  %v1679_v55 = vld [vmem:[%s2104_s13 + $0x38] sm:$0xff] }
 0x112   :  { %1255 = vmatmul.msk.bf16.vlgmr.msra.gmra.mxu2 %vm108_vm0, %v243_v8  ;;  %1256 = vmatmul.msk.bf16.vlgmr.msra.gmra.mxu3 %vm108_vm0, %v243_v8 }
 0x113   :  { %1257 = vmatmul.msk.bf16.vlgmr.msra.gmra.mxu0 %vm108_vm0, %v243_v8  ;;  %854 = vmatpush.bf16.msra.mxu2 %v1510_v12  ;;  %v1375_v12 = vld [vmem:[#allocation4 + $0xe8] sm:$0xf0] }
 0x114   :  { %867 = vmatpush.bf16.msra.mxu3 %v1322_v62  ;;  %880 = vmatpush.bf16.msra.mxu0 %v1386_v2  ;;  %v1378_v13 = vor.u32 %v1636_v10, %v1375_v12  ;;  %v1668_v62 = vld [vmem:[#allocation4 + $0x1e4] sm:$0xf]  ;;  %v1335_v10 = vld [vmem:[#allocation4 + $0x98] sm:$0xf0] }
 0x115   :  { %899 = vmatpush.bf16.msrb.mxu1 %v1402_v56  ;;  %v1506_v1 = vor.u32 %v1668_v62, %v1503_v63  ;;  %v1640_v2 = vld [vmem:[#allocation4 + $0x104] sm:$0xf]  ;;  %v1495_v12 = vld [vmem:[#allocation4 + $0x1d8] sm:$0xf0] }
 0x116   :  { %v1394_v5 = vor.u32 %v1640_v2, %v1391_v3 }
 0x117   :  { %855 = vmatpush.bf16.msra.mxu2 %v1502_v32  ;;  %v1616_v32 = vld [vmem:[#allocation4 + $0x44] sm:$0xf] }
 0x118   :  { %881 = vmatpush.bf16.msra.mxu0 %v1378_v13  ;;  %v1298_v35 = vor.u32 %v1616_v32, %v1295_v33  ;;  %v1662_v33 = vld [vmem:[#allocation4 + $0x1b4] sm:$0xf] }
 0x119   :  { %900 = vmatpush.bf16.msrb.mxu1 %v1394_v5 }
 0x11b   :  { %856 = vmatpush.bf16.msra.mxu2 %v1494_v47  ;;  %v1290_v47 = vor.u32 %v1614_v44, %v1287_v45  ;;  %v1658_v44 = vld [vmem:[#allocation4 + $0x194] sm:$0xf]  ;;  %v1463_v45 = vld [vmem:[#allocation4 + $0x198] sm:$0xf0] }
 0x11c   :  { %882 = vmatpush.bf16.msra.mxu0 %v1370_v25  ;;  %v1664_v25 = vld [vmem:[#allocation4 + $0x1c4] sm:$0xf]  ;;  %v1466_v49 = vor.u32 %v1658_v44, %v1463_v45 }
 0x11d   :  { %v1490_v30 = vor.u32 %v1664_v25, %v1487_v27 }
 0x11f   :  { %857 = vmatpush.bf16.msra.mxu2 %v1486_v61  ;;  %v1343_v61 = vld [vmem:[#allocation4 + $0xa8] sm:$0xf0] }
 0x120   :  { %883 = vmatpush.bf16.msra.mxu0 %v1362_v37  ;;  %v1346_v0 = vor.u32 %v1628_v59, %v1343_v61 }
 0x122   :  { %1258 = vmatmul.msk.bf16.vlgmr.msrb.gmra.mxu2 %vm108_vm0, %v243_v8  ;;  %v1620_v8 = vld [vmem:[#allocation4 + $0x64] sm:$0xf] }
 0x123   :  { %v1314_v11 = vor.u32 %v1620_v8, %v1311_v9  ;;  %858 = vmatpush.bf16.msra.mxu2 %v1478_v7  ;;  %v1271_v7 = vld [vmem:[#allocation4 + $0x18] sm:$0xf0]  ;;  %v1626_v8 = vld [vmem:[#allocation4 + $0x94] sm:$0xf] }
 0x124   :  { %884 = vmatpush.bf16.msra.mxu0 %v1354_v51  ;;  %v1274_v9 = vor.u32 %v1610_v6, %v1271_v7  ;;  %v1338_v14 = vor.u32 %v1626_v8, %v1335_v10  ;;  %v1678_v8 = vld [vmem:[%s2104_s13 + $0x30] sm:$0xff]  ;;  %v1676_v10 = vld [vmem:[%s2104_s13 + $0x20] sm:$0xff] }
 0x125   :  { %868 = vmatpush.bf16.msra.mxu3 %v1314_v11  ;;  %v1666_v11 = vld [vmem:[#allocation4 + $0x1d4] sm:$0xf] }
 0x126   :  { %v1498_v15 = vor.u32 %v1666_v11, %v1495_v12  ;;  %v1675_v11 = vld [vmem:[%s2104_s13 + $0x18] sm:$0xff] }
 0x127   :  { %859 = vmatpush.bf16.msra.mxu2 %v1470_v19  ;;  %v1608_v19 = vld [vmem:[#allocation4 + $0x4] sm:$0xf]  ;;  %v1687_v12 = vld [vmem:[%s2104_s13 + $0x78] sm:$0xff] }
 0x128   :  { %885 = vmatpush.bf16.msra.mxu0 %v1346_v0 }
 0x129   :  { %869 = vmatpush.bf16.msra.mxu3 %v1306_v23  ;;  %v1266_v23 = vor.u32 %v1608_v19, %v1263_v20  ;;  %v1672_v20 = vld [vmem:[%s2104_s13] sm:$0xff] }
 0x12b   :  { %860 = vmatpush.bf16.msra.mxu2 %v1462_v31 }
 0x12c   :  { %886 = vmatpush.bf16.msra.mxu0 %v1338_v14  ;;  %v1674_v14 = vld [vmem:[%s2104_s13 + $0x10] sm:$0xff] }
 0x12d   :  { %870 = vmatpush.bf16.msra.mxu3 %v1298_v35  ;;  %v1482_v35 = vor.u32 %v1662_v33, %v1479_v34 }
 0x12f   :  { %861 = vmatpush.bf16.msra.mxu2 %v1454_v43 }
 0x130   :  { %887 = vmatpush.bf16.msra.mxu0 %v1330_v26 }
 0x131   :  { %871 = vmatpush.bf16.msra.mxu3 %v1290_v47 }
 0x133   :  { %906 = vmatpush.bf16.msrb.mxu2 %v1514_v52  ;;  %v1656_v52 = vld [vmem:[#allocation4 + $0x184] sm:$0xf] }
 0x135   :  { %872 = vmatpush.bf16.msra.mxu3 %v1282_v60  ;;  %v1458_v60 = vor.u32 %v1656_v52, %v1455_v53 }
 0x137   :  { %907 = vmatpush.bf16.msrb.mxu2 %v1506_v1 }
 0x139   :  { %873 = vmatpush.bf16.msra.mxu3 %v1274_v9  ;;  %v1677_v9 = vld [vmem:[%s2104_s13 + $0x28] sm:$0xff] }
 0x13b   :  { %908 = vmatpush.bf16.msrb.mxu2 %v1498_v15  ;;  %v1686_v15 = vld [vmem:[%s2104_s13 + $0x70] sm:$0xff] }
 0x13d   :  { %874 = vmatpush.bf16.msra.mxu3 %v1266_v23 }
 0x13f   :  { %909 = vmatpush.bf16.msrb.mxu2 %v1490_v30 }
 0x143   :  { %910 = vmatpush.bf16.msrb.mxu2 %v1482_v35  ;;  %v1680_v35 = vld [vmem:[%s2104_s13 + $0x40] sm:$0xff] }
 0x147   :  { %911 = vmatpush.bf16.msrb.mxu2 %v1474_v42 }
 0x14b   :  { %912 = vmatpush.bf16.msrb.mxu2 %v1466_v49 }
 0x14f   :  { %913 = vmatpush.bf16.msrb.mxu2 %v1458_v60 }
 0x190   :  { %v388_v13 = vpop.f32.mrf.mxu0 }
 0x191   :  { %v389_v16 = vadd.f32 %v388_v13, %v264_v4 }
 0x193   :  { %v407_v22 = vmul.f32 0.5, %v389_v16  ;;  %v1673_v16 = vld [vmem:[%s2104_s13 + $0x8] sm:$0xff] }
 0x195   :  { %1705 = vtanh.f32 %v407_v22  ;;  %v362_v28 = vpop.f32.mrf.mxu2  ;;  %v375_v29 = vpop.f32.mrf.mxu3  ;;  %v489_v22 = vld [vmem:[%s2103_s12] sm:$0x3] }
 0x196   :  { %v363_v31 = vadd.f32 %v362_v28, %v262_v17  ;;  %v376_v32 = vadd.f32 %v375_v29, %v263_v18  ;;  %v1685_v17 = vld [vmem:[%s2104_s13 + $0x68] sm:$0xff]  ;;  %v491_v25 = vperm.slane %v489_v22, 0  ;;  %v1682_v28 = vld [vmem:[%s2104_s13 + $0x50] sm:$0xff] }
 0x198   :  { %v405_v36 = vmul.f32 0.5, %v363_v31  ;;  %v406_v37 = vmul.f32 0.5, %v376_v32  ;;  %v390_v38 = vpop.f32.mrf.mxu0  ;;  %v1681_v31 = vld [vmem:[%s2104_s13 + $0x48] sm:$0xff]  ;;  %s1515_s13 = sld [smem:[#allocation3 + $0x3]] }
 0x19a   :  { %1707 = vtanh.f32 %v405_v36 }
 0x19b   :  { %v1706_v41 = vpop.eup %1705  ;;  %1709 = vtanh.f32 %v406_v37 }
 0x19c   :  { %v415_v43 = vmul.f32 0.5, %v1706_v41  ;;  %v492_v41 = vperm.slane %v489_v22, 1 }
 0x19d   :  { %v364_v46 = vpop.f32.mrf.mxu2  ;;  %v377_v47 = vpop.f32.mrf.mxu3 }
 0x19e   :  { %v419_v48 = vadd.f32 0.5, %v415_v43 }
 0x1a0   :  { %v1708_v50 = vpop.eup %1707  ;;  %v423_v51 = vpack.c.bf16 %v419_v48, %v419_v48 }
 0x1a1   :  { %v1710_v54 = vpop.eup %1709  ;;  %v413_v56 = vmul.f32 0.5, %v1708_v50 }
 0x1a2   :  { %v414_v57 = vmul.f32 0.5, %v1710_v54  ;;  %849 = vmatmul.bf16.vlgmr.msra.gmra.mxu1 %v423_v51 }
 0x1a3   :  { %v417_v59 = vadd.f32 0.5, %v413_v56 }
 0x1a4   :  { %v418_v61 = vadd.f32 0.5, %v414_v57 }
 0x1a5   :  { %v401_v62 = vpop.f32.mrf.mxu2  ;;  %v421_v63 = vpack.c.bf16 %v417_v59, %v417_v59 }
 0x1a6   :  { %v402_v0 = vadd.f32 %v401_v62, %v265_v58  ;;  %v422_v1 = vpack.c.bf16 %v418_v61, %v418_v61  ;;  %v962_v62 = vstv %s1515_s13 }
 0x1a7   :  { %823 = vmatmul.bf16.vlgmr.msrb.gmra.mxu3 %v421_v63 }
 0x1a8   :  { %v408_v2 = vmul.f32 0.5, %v402_v0  ;;  %836 = vmatmul.bf16.vlgmr.msrb.gmra.mxu0 %v422_v1  ;;  %1059 = vmatpush.bf16.msrb.mxu3 %v1679_v55 }
 0x1a9   :  { %1072 = vmatpush.bf16.msrb.mxu0 %v1687_v12 }
 0x1aa   :  { %1711 = vtanh.f32 %v408_v2 }
 0x1ac   :  { %1060 = vmatpush.bf16.msrb.mxu3 %v1678_v8 }
 0x1ad   :  { %v403_v3 = vpop.f32.mrf.mxu2  ;;  %1073 = vmatpush.bf16.msrb.mxu0 %v1686_v15 }
 0x1b0   :  { %v1712_v4 = vpop.eup %1711  ;;  %1061 = vmatpush.bf16.msrb.mxu3 %v1677_v9 }
 0x1b1   :  { %v416_v5 = vmul.f32 0.5, %v1712_v4  ;;  %1074 = vmatpush.bf16.msrb.mxu0 %v1685_v17 }
 0x1b2   :  { %901 = vmatmul.bf16.vlgmr.msrb.gmra.mxu1 %v423_v51 }
 0x1b3   :  { %v420_v6 = vadd.f32 0.5, %v416_v5 }
 0x1b4   :  { %1062 = vmatpush.bf16.msrb.mxu3 %v1676_v10 }
 0x1b5   :  { %v424_v7 = vpack.c.bf16 %v420_v6, %v420_v6  ;;  %1075 = vmatpush.bf16.msrb.mxu0 %v1684_v21 }
 0x1b7   :  { %862 = vmatmul.bf16.vlgmr.msra.gmra.mxu2 %v424_v7  ;;  %875 = vmatmul.bf16.vlgmr.msra.gmra.mxu3 %v421_v63 }
 0x1b8   :  { %888 = vmatmul.bf16.vlgmr.msra.gmra.mxu0 %v422_v1  ;;  %1063 = vmatpush.bf16.msrb.mxu3 %v1675_v11 }
 0x1b9   :  { %1076 = vmatpush.bf16.msrb.mxu0 %v1683_v24 }
 0x1bc   :  { %1064 = vmatpush.bf16.msrb.mxu3 %v1674_v14 }
 0x1bd   :  { %1077 = vmatpush.bf16.msrb.mxu0 %v1682_v28 }
 0x1c0   :  { %1065 = vmatpush.bf16.msrb.mxu3 %v1673_v16 }
 0x1c1   :  { %1078 = vmatpush.bf16.msrb.mxu0 %v1681_v31 }
 0x1c4   :  { %1066 = vmatpush.bf16.msrb.mxu3 %v1672_v20 }
 0x1c5   :  { %1079 = vmatpush.bf16.msrb.mxu0 %v1680_v35 }
 0x1c7   :  { %914 = vmatmul.bf16.vlgmr.msrb.gmra.mxu2 %v424_v7 }
 0x21f   :  { %v850_v13 = vpop.f32.mrf.mxu1 }
 0x225   :  { %v837_v18 = vpop.f32.mrf.mxu0 }
 0x227   :  { %v852_v19 = vpop.f32.mrf.mxu1 }
 0x22a   :  { %v824_v23 = vpop.f32.mrf.mxu3 }
 0x22b   :  { %v825_v29 = vadd.f32 %v824_v23, %v491_v25 }
 0x22d   :  { %v839_v26 = vpop.f32.mrf.mxu0  ;;  %v838_v32 = vadd.f32 %v837_v18, %v825_v29 }
 0x22f   :  { %v902_v27 = vpop.f32.mrf.mxu1  ;;  %v851_v36 = vadd.f32 %v850_v13, %v838_v32 }
 0x232   :  { %v826_v30 = vpop.f32.mrf.mxu3 }
 0x235   :  { %v889_v33 = vpop.f32.mrf.mxu0 }
 0x237   :  { %v904_v34 = vpop.f32.mrf.mxu1 }
 0x23a   :  { %v863_v37 = vpop.f32.mrf.mxu2  ;;  %v876_v38 = vpop.f32.mrf.mxu3 }
 0x23b   :  { %v864_v39 = vadd.f32 %v863_v37, %v851_v36  ;;  %v877_v43 = vadd.f32 %v876_v38, %v492_v41 }
 0x23d   :  { %v919_v40 = vmul.f32 0.5, %v864_v39  ;;  %v891_v42 = vpop.f32.mrf.mxu0  ;;  %v890_v47 = vadd.f32 %v889_v33, %v877_v43 }
 0x23f   :  { %1713 = vtanh.f32 %v919_v40  ;;  %v903_v50 = vadd.f32 %v902_v27, %v890_v47 }
 0x242   :  { %v865_v44 = vpop.f32.mrf.mxu2  ;;  %v878_v45 = vpop.f32.mrf.mxu3 }
 0x245   :  { %v1714_v46 = vpop.eup %1713 }
 0x246   :  { %v923_v48 = vmul.f32 0.5, %v1714_v46 }
 0x248   :  { %v925_v49 = vadd.f32 0.5, %v923_v48 }
 0x24a   :  { %v927_v51 = vpack.c.bf16 %v925_v49, %v925_v49  ;;  %v915_v52 = vpop.f32.mrf.mxu2 }
 0x24b   :  { %v916_v53 = vadd.f32 %v915_v52, %v903_v50 }
 0x24c   :  { %1067 = vmatmul.bf16.vlgmr.msrb.gmra.mxu3 %v927_v51 }
 0x24d   :  { %v920_v54 = vmul.f32 0.5, %v916_v53 }
 0x24f   :  { %1715 = vtanh.f32 %v920_v54 }
 0x252   :  { %v917_v56 = vpop.f32.mrf.mxu2 }
 0x255   :  { %v1716_v57 = vpop.eup %1715 }
 0x256   :  { %v924_v58 = vmul.f32 0.5, %v1716_v57 }
 0x258   :  { %v926_v59 = vadd.f32 0.5, %v924_v58 }
 0x25a   :  { %v928_v60 = vpack.c.bf16 %v926_v59, %v926_v59 }
 0x25c   :  { %1080 = vmatmul.bf16.vlgmr.msrb.gmra.mxu0 %v928_v60 }
 0x2cf   :  { %v1068_v61 = vpop.f32.mrf.mxu3 }
 0x2d0   :  { %v1069_v0 = vadd.f32 %v1068_v61, %v962_v62 }
 0x2d7   :  { %v1070_v63 = vpop.f32.mrf.mxu3 }
 0x2d9   :  { %v1081_v1 = vpop.f32.mrf.mxu0 }
 0x2da   :  { %v1082_v2 = vadd.f32 %v1081_v1, %v1069_v0 }
 0x2dc   :  { %v1085_v3 = vmul.f32 0.5, %v1082_v2 }
 0x2de   :  { %1717 = vtanh.f32 %v1085_v3 }
 0x2e1   :  { %v1083_v4 = vpop.f32.mrf.mxu0 }
 0x2e4   :  { %v1718_v5 = vpop.eup %1717 }
 0x2e5   :  { %v1087_v6 = vmul.f32 0.5, %v1718_v5 }
 0x2e7   :  { %v1088_v7 = vadd.f32 0.5, %v1087_v6 }
 0x2e9   :  { %1089 = vxpose.xlu1.b32.start.end [1/1] (short) (narrow) %v1088_v7, 8 }
 0x38d   :  { %v1105_v55 = vpop.trf.xlu1 }
 0x38e   :  { %1122 = vst.msk [vmem:[#allocation7] sm:$0x1] %vm1121_vm1, %v1105_v55 }
 0x38f   :  { %1133 = dma.vmem_to_hbm [thread:$0]  %s1129_s8, 16, %s1131_s21, [#allocation6]  }
 0x390   :  { %1783 = dma.done.wait [#allocation6], 16  }
 0x391   :  { %1784 = vsyncadd [#allocation6], 4294967280 }
 0x392   :  { %1138 = vsyncpa [#allocation5], 1 }
 0x393   :  { %1139 = vsyncpa [#allocation6], 1 }

</bundles_post_ra>
